<compile_context>
chip_gen: v7x
topology: tpu7x:2x2x1
jax: 0.10.0
libtpu: 0.0.40
codegen_flags: <defaults>
</compile_context>

<pallas_src>
import functools

import jax
import jax.numpy as jnp
from jax import lax
from jax.experimental import pallas as pl
from jax.experimental.pallas import tpu as pltpu


def _round_up(x, m):
    return ((x + m - 1) // m) * m


def _vmem_capacity_bytes():
    try:
        cap = getattr(pltpu.get_tpu_info(), "vmem_capacity_bytes", None)
        if cap:
            return int(cap)
    except Exception:
        pass
    return 64 << 20          # conservative fallback (v7x per-core VMEM)


def _matching_kernel(nt_ref, hs_ref, htT_ref, out_ref, *, sim, c):
    b = pl.program_id(0)
    n_t = nt_ref[b]                              # valid target nodes (SMEM scalar)

    N_t_pad = htT_ref.shape[2]

    hs = hs_ref[0]                               # (TSM, C)      input dtype
    htT = htT_ref[0]                             # (C, N_t_pad)  channel 0 pre-negated

    # MXU contraction; RHS is already (K=C, N=N_t_pad) so no per-step relayout.
    # The wrapper's channel-0 negation of h_t realises the "-2*x0*y0" term.
    S = lax.dot_general(hs, htT, (((1,), (0,)), ((), ())),
                        preferred_element_type=jnp.float32)   # (TSM, N_t_pad)

    if sim == 'sqdist':
        # K = 1/c ;  S = -K * acosh(clamp(-S/K, 1+1e-15))^2
        z = jnp.maximum(S * jnp.float32(-c), jnp.float32(1.0 + 1e-15))
        t = z - 1.0
        # acosh(z) = log(z + sqrt((z-1)*(z+1))): the factored sqrt argument
        # avoids the z*z-1 catastrophic cancellation near z = 1 (matches
        # jnp.arccosh to f32 precision at softmax-relevant scales).
        ach = jnp.log(z + jnp.sqrt(t * (z + 1.0)))
        S = ach * ach * jnp.float32(-1.0 / c)

    # Target-column validity from the prefetched count (lane-oriented iota,
    # broadcast over sublanes — no mask DMAs, no transposes).
    col = lax.broadcasted_iota(jnp.int32, (1, N_t_pad), 1)
    valid = col < n_t
    S = S + jnp.where(valid, jnp.float32(0.0), jnp.float32(-1e30))

    # Masked softmax over the target axis.  Invalid columns are zeroed
    # multiplicatively so an n_t == 0 graph yields exactly-zero rows.
    row_max = jnp.max(S, axis=-1, keepdims=True)
    p = jnp.where(valid, jnp.exp(S - row_max), jnp.float32(0.0))
    denom = jnp.sum(p, axis=-1, keepdims=True)
    denom = jnp.maximum(denom, jnp.float32(1.0))  # only binds when n_t == 0
    inv = pl.reciprocal(denom, approx=True)       # EUP, (TSM, 1) column
    inv = inv * (2.0 - denom * inv)               # one Newton step, full precision
    out_ref[0] = (p * inv).astype(out_ref.dtype)


def hyperbolic_matching(h_s, h_t, n_t_counts, *, sim='dot', c=1.0,
                        out_dtype=jnp.float32, tile_m=None):
    """Dense-path correspondence matrix, padded to [B, N_s_pad, N_t_pad].

    Padded target columns are exact zeros.  Padded / invalid source rows are
    not zeroed; they are meant to be dropped by the caller's `[s_mask]` row
    gather exactly as in HyperbolicGraphMatching.forward.
    """
    assert sim in ('dot', 'sqdist')
    if sim == 'sqdist':
        assert c > 0, "sim='sqdist' requires a positive curvature c"

    B, N_s, C = h_s.shape
    N_t = h_t.shape[1]
    in_bytes = jnp.dtype(h_s.dtype).itemsize
    out_bytes = jnp.dtype(out_dtype).itemsize

    # Lane-dense output: target axis padded to a multiple of 128.
    N_t_pad = _round_up(N_t, 128)

    vmem_cap = _vmem_capacity_bytes()
    if tile_m is None:
        # ~2 MiB of f32 output per grid step (amortizes ~0.35 us/step
        # overhead), capped so the ~6 f32 (TSM, N_t_pad) live slabs stay
        # under ~60% of VMEM (matters on v7x's 64 MiB cores).
        tsm_target = (2 << 20) // max(4 * N_t_pad, 1)
        tsm_cap = int(0.6 * vmem_cap) // max(24 * N_t_pad, 1)
        TSM = max(min(tsm_target, tsm_cap), 8)
    else:
        TSM = max(int(tile_m), 8)
    TSM = _round_up(min(TSM, _round_up(N_s, 8)), 8)
    N_s_pad = _round_up(N_s, TSM)
    # v7x megacore: keep at least 2 grid steps on a "parallel" axis.
    while B * (N_s_pad // TSM) < 2 and TSM > 8:
        TSM = _round_up(max(TSM // 2, 8), 8)
        N_s_pad = _round_up(N_s, TSM)

    if N_s_pad != N_s:
        h_s = jnp.pad(h_s, ((0, 0), (0, N_s_pad - N_s), (0, 0)))

    # Fold the Minkowski "-2*x0*y0" correction into the contraction by
    # negating channel 0 of h_t, and pre-transpose to (B, C, N_t_pad) so the
    # MXU RHS needs no per-step relayout (one cheap fused XLA op).
    sgn = jnp.where(jnp.arange(C) == 0, -1.0, 1.0).astype(h_t.dtype)
    h_tT = jnp.swapaxes(h_t * sgn, 1, 2)              # (B, C, N_t)
    if N_t_pad != N_t:
        h_tT = jnp.pad(h_tT, ((0, 0), (0, 0), (0, N_t_pad - N_t)))

    # Explicit VMEM budget from actual block sizes (double-buffered I/O plus
    # f32 softmax intermediates), capped below the queried per-core capacity
    # (~56 MiB of 64 MiB on v7x, up to ~100 MiB of 128 MiB on v5e/v6e).
    est = (2 * TSM * C * in_bytes
           + 2 * C * N_t_pad * in_bytes
           + 2 * TSM * N_t_pad * out_bytes
           + 4 * TSM * N_t_pad * 4
           + (2 << 20))
    ceiling = min(int(0.85 * vmem_cap), 100 << 20)
    vmem_bytes = int(min(max(est, 4 << 20), ceiling))

    cost = pl.CostEstimate(
        flops=2 * B * N_s_pad * N_t_pad * C,
        transcendentals=B * N_s_pad * N_t_pad * (3 if sim == 'sqdist' else 1),
        bytes_accessed=(B * (N_s_pad + N_t_pad) * C * in_bytes
                        + B * N_s_pad * N_t_pad * out_bytes))

    kernel = functools.partial(_matching_kernel, sim=sim, c=float(c))
    out = pl.pallas_call(
        kernel,
        out_shape=jax.ShapeDtypeStruct((B, N_s_pad, N_t_pad), out_dtype),
        grid_spec=pltpu.PrefetchScalarGridSpec(
            num_scalar_prefetch=1,
            grid=(B, N_s_pad // TSM),
            in_specs=[
                pl.BlockSpec((1, TSM, C), lambda b, i, nt: (b, i, 0)),
                pl.BlockSpec((1, C, N_t_pad), lambda b, i, nt: (b, 0, 0)),
            ],
            out_specs=pl.BlockSpec((1, TSM, N_t_pad), lambda b, i, nt: (b, i, 0)),
        ),
        compiler_params=pltpu.CompilerParams(
            dimension_semantics=("parallel", "parallel"),
            vmem_limit_bytes=vmem_bytes),
        cost_estimate=cost,
    )(n_t_counts.astype(jnp.int32), h_s, h_tT)
    # No post-kernel slice: a [:, :N_s, :N_t] copy would roughly double the
    # HBM traffic of this writeback-bound kernel.  Callers gather rows.
    return out


def to_dense_batch(h, batch, B, N_max):
    """JAX equivalent of torch_geometric.utils.to_dense_batch (batch sorted)."""
    n = h.shape[0]
    counts = jnp.zeros((B,), jnp.int32).at[batch].add(1)
    ptr = jnp.concatenate(
        [jnp.zeros((1,), jnp.int32), jnp.cumsum(counts)[:-1]])
    pos = jnp.arange(n, dtype=jnp.int32) - ptr[batch]
    dense = jnp.zeros((B, N_max, h.shape[1]), h.dtype).at[batch, pos].set(h)
    mask = jnp.zeros((B, N_max), bool).at[batch, pos].set(True)
    return dense, mask, pos, counts


if __name__ == "__main__":
    key = jax.random.PRNGKey(0)
    B = 2
    C_in, C_out = 8, 32
    ns, nt = [6, 8], [8, 5]                      # nodes per source/target graph
    N_s, N_t = max(ns), max(nt)

    k1, k2, k3, k4 = jax.random.split(key, 4)
    x_s = jax.random.normal(k1, (sum(ns), C_in), jnp.float32)
    x_t = jax.random.normal(k2, (sum(nt), C_in), jnp.float32)
    batch_s = jnp.concatenate(
        [jnp.full((n,), i, jnp.int32) for i, n in enumerate(ns)])
    batch_t = jnp.concatenate(
        [jnp.full((n,), i, jnp.int32) for i, n in enumerate(nt)])

    # psi: deterministic node-wise linear encoder (stands in for the external GNN).
    # TODO(synk): psi is a user-supplied GNN module; its edge-based message
    # passing is not reproduced here (edge_index / edge_attr unused).
    W = jax.random.normal(k3, (C_in, C_out), jnp.float32) * 0.1
    b = jax.random.normal(k4, (C_out,), jnp.float32) * 0.1
    h_s_flat = x_s @ W + b
    h_t_flat = x_t @ W + b

    h_s, s_mask, pos_s, n_s_counts = to_dense_batch(h_s_flat, batch_s, B, N_s)
    h_t, t_mask, _, n_t_counts = to_dense_batch(h_t_flat, batch_t, B, N_t)

    mask2 = s_mask[:, :, None] & t_mask[:, None, :]
    S_inner = (jnp.einsum('bsc,btc->bst', h_s, h_t)
               - 2.0 * jnp.einsum('bs,bt->bst', h_s[..., 0], h_t[..., 0]))

    for sim in ('dot', 'sqdist'):
        S0_dense = hyperbolic_matching(h_s, h_t, n_t_counts, sim=sim, c=1.0)
        # forward returns S_0[s_mask]: gather valid source rows (batch sorted)
        # and keep the first N_t columns (padded columns are exact zeros).
        S0 = S0_dense[batch_s, pos_s][:, :N_t]   # (total_s_nodes, N_t)
        jax.block_until_ready(S0)

        # plain-JAX reference check
        S_ref = S_inner
        if sim == 'sqdist':
            K = 1.0
            S_ref = -K * jnp.arccosh(
                jnp.maximum(-S_ref / K, 1.0 + 1e-15)) ** 2
        S_ref = jnp.where(mask2, S_ref, -jnp.inf)
        S_ref = jax.nn.softmax(S_ref, axis=-1)
        S_ref = jnp.nan_to_num(jnp.where(mask2, S_ref, 0.0))
        assert jnp.allclose(S0, S_ref[batch_s, pos_s], atol=1e-4), \
            f"kernel mismatch (sim={sim})"

    # n_t == 0 edge case: that graph's rows must be exactly zero (matches
    # masked_softmax's trailing masked_fill-to-zero semantics).
    S0_zero = hyperbolic_matching(
        h_s, h_t, jnp.array([nt[0], 0], jnp.int32), sim='dot')
    jax.block_until_ready(S0_zero)
    assert bool(jnp.all(S0_zero[1] == 0.0)), "n_t==0 rows not zero"

    # bf16 output path: halves the dominant HBM writeback; math stays f32.
    S0_bf16 = hyperbolic_matching(h_s, h_t, n_t_counts, sim='dot',
                                  out_dtype=jnp.bfloat16)
    jax.block_until_ready(S0_bf16)

    print("KERNEL_OK")
</pallas_src>

<mosaic_0001>
module attributes {stable_mosaic.version = 11 : i64} {
  func.func @_matching_kernel(%arg0: i32, %arg1: i32, %arg2: memref<2xi32, #tpu.memory_space<smem>>, %arg3: memref<1x8x32xf32, #tpu.memory_space<vmem>>, %arg4: memref<1x32x128xf32, #tpu.memory_space<vmem>>, %arg5: memref<1x8x128xf32, #tpu.memory_space<vmem>>) attributes {dimension_semantics = [#tpu.dimension_semantics<parallel>, #tpu.dimension_semantics<parallel>], iteration_bounds = array<i64: 2, 1>, scalar_prefetch = 1 : i64, scratch_operands = 0 : i64, tpu.core_type = #tpu.core_type<tc>, window_params = [{transform_indices = @transform_0, window_bounds = array<i64: 1, 8, 32>}, {transform_indices = @transform_1, window_bounds = array<i64: 1, 32, 128>}, {transform_indices = @transform_2, window_bounds = array<i64: 1, 8, 128>}]} {
    %0 = arith.index_cast %arg0 : i32 to index
    %1 = memref.load %arg2[%0] : memref<2xi32, #tpu.memory_space<smem>>
    %c0 = arith.constant 0 : index
    %c0_0 = arith.constant 0 : index
    %c0_1 = arith.constant 0 : index
    %2 = vector.load %arg3[%c0, %c0_0, %c0_1] : memref<1x8x32xf32, #tpu.memory_space<vmem>>, vector<1x8x32xf32>
    %3 = vector.shape_cast %2 : vector<1x8x32xf32> to vector<8x32xf32>
    %c0_2 = arith.constant 0 : index
    %c0_3 = arith.constant 0 : index
    %c0_4 = arith.constant 0 : index
    %4 = vector.load %arg4[%c0_2, %c0_3, %c0_4] : memref<1x32x128xf32, #tpu.memory_space<vmem>>, vector<1x32x128xf32>
    %5 = vector.shape_cast %4 : vector<1x32x128xf32> to vector<32x128xf32>
    %cst = arith.constant dense<0.000000e+00> : vector<8x128xf32>
    %6 = tpu.matmul %3, %5, %cst {dimension_numbers = #tpu.dot_dimension_numbers<[1], [0], [0], [1], [0, 0, 1, 1], [], []>} : vector<8x32xf32>, vector<32x128xf32>, vector<8x128xf32> -> vector<8x128xf32>
    %7 = tpu.iota {dimensions = array<i32: 1>} : vector<1x128xi32>
    %8 = vector.broadcast %1 : i32 to vector<1x128xi32>
    %9 = arith.cmpi slt, %7, %8 : vector<1x128xi32>
    %cst_5 = arith.constant 0.000000e+00 : f32
    %cst_6 = arith.constant -1.000000e+30 : f32
    %10 = vector.broadcast %cst_5 : f32 to vector<1x128xf32>
    %11 = vector.broadcast %cst_6 : f32 to vector<1x128xf32>
    %12 = arith.select %9, %10, %11 : vector<1x128xi1>, vector<1x128xf32>
    %13 = vector.broadcast %12 : vector<1x128xf32> to vector<8x128xf32>
    %14 = arith.addf %6, %13 : vector<8x128xf32>
    %cst_7 = arith.constant dense<0xFF800000> : vector<8xf32>
    %15 = vector.multi_reduction <maximumf>, %14, %cst_7 [1] : vector<8x128xf32> to vector<8xf32>
    %16 = vector.shape_cast %15 : vector<8xf32> to vector<8x1xf32>
    %17 = vector.broadcast %16 : vector<8x1xf32> to vector<8x128xf32>
    %18 = arith.subf %14, %17 : vector<8x128xf32>
    %19 = math.exp %18 : vector<8x128xf32>
    %cst_8 = arith.constant 0.000000e+00 : f32
    %20 = vector.shape_cast %9 : vector<1x128xi1> to vector<1x128xi1>
    %21 = vector.broadcast %20 : vector<1x128xi1> to vector<8x128xi1>
    %22 = vector.broadcast %cst_8 : f32 to vector<8x128xf32>
    %23 = arith.select %21, %19, %22 : vector<8x128xi1>, vector<8x128xf32>
    %cst_9 = arith.constant dense<0.000000e+00> : vector<8xf32>
    %24 = vector.multi_reduction <add>, %23, %cst_9 [1] : vector<8x128xf32> to vector<8xf32>
    %25 = vector.shape_cast %24 : vector<8xf32> to vector<8x1xf32>
    %cst_10 = arith.constant 1.000000e+00 : f32
    %26 = vector.broadcast %cst_10 : f32 to vector<8x1xf32>
    %27 = arith.maximumf %25, %26 : vector<8x1xf32>
    %28 = tpu.reciprocal %27 {approx = true} : vector<8x1xf32> -> vector<8x1xf32>
    %29 = arith.mulf %27, %28 : vector<8x1xf32>
    %cst_11 = arith.constant 2.000000e+00 : f32
    %30 = vector.broadcast %cst_11 : f32 to vector<8x1xf32>
    %31 = arith.subf %30, %29 : vector<8x1xf32>
    %32 = arith.mulf %28, %31 : vector<8x1xf32>
    %33 = vector.broadcast %32 : vector<8x1xf32> to vector<8x128xf32>
    %34 = arith.mulf %23, %33 : vector<8x128xf32>
    %c0_12 = arith.constant 0 : index
    %c0_13 = arith.constant 0 : index
    %c0_14 = arith.constant 0 : index
    %35 = vector.load %arg5[%c0_12, %c0_13, %c0_14] : memref<1x8x128xf32, #tpu.memory_space<vmem>>, vector<1x8x128xf32>
    %36 = vector.shape_cast %35 : vector<1x8x128xf32> to vector<8x128xf32>
    %37 = vector.shape_cast %34 : vector<8x128xf32> to vector<1x8x128xf32>
    tpu.vector_store %arg5[%c0_12, %c0_13, %c0_14], %37 {strides = array<i32>} : memref<1x8x128xf32, #tpu.memory_space<vmem>>, vector<1x8x128xf32>,
    return
  }
  func.func @transform_0(%arg0: i32, %arg1: i32, %arg2: memref<2xi32, #tpu.memory_space<smem>>) -> (i32, i32, i32) {
    %c0_i32 = arith.constant 0 : i32
    %c0_i32_0 = arith.constant 0 : i32
    return %arg0, %arg1, %c0_i32 : i32, i32, i32
  }
  func.func @transform_1(%arg0: i32, %arg1: i32, %arg2: memref<2xi32, #tpu.memory_space<smem>>) -> (i32, i32, i32) {
    %c0_i32 = arith.constant 0 : i32
    %c0_i32_0 = arith.constant 0 : i32
    %c0_i32_1 = arith.constant 0 : i32
    return %arg0, %c0_i32, %c0_i32_0 : i32, i32, i32
  }
  func.func @transform_2(%arg0: i32, %arg1: i32, %arg2: memref<2xi32, #tpu.memory_space<smem>>) -> (i32, i32, i32) {
    %c0_i32 = arith.constant 0 : i32
    %c0_i32_0 = arith.constant 0 : i32
    return %arg0, %arg1, %c0_i32 : i32, i32, i32
  }
}

</mosaic_0001>

<bundles_post_ra>
// kernel: tpu_custom_call.1
= control target key start
LH: loop header
LB: loop body
LE: loop exit
PB: predicated region body
PF: predicated region fallthrough
CT: control target
= control target key end

     0   :  { %s990_s0 = inlined_call_operand.hbm [shape: s32[2], index: 0, kind: input, shape index: {}]   ;;  %s991_s1 = inlined_call_operand.hbm [shape: f32[2,8,32], index: 1, kind: input, shape index: {}]   ;;  %s992_s2 = inlined_call_operand.hbm [shape: f32[2,32,128], index: 2, kind: input, shape index: {}]   ;;  %s993_s3 = inlined_call_operand.hbm [shape: f32[2,8,128], index: 3, kind: output, shape index: {}]  }
   0x1   :  { %s560_s14 = scalar_lea.hbm %s990_s0, 16 }
   0x2   :  { %p561_p0 = scmp.ne.s32.totalorder %s990_s0, %s560_s14  ;;  %p564_p1 = scmp.lt.u32.totalorder %s560_s14, %s990_s0 }
   0x4   :  { %p566_p2 = pnand %p564_p1, %p561_p0 }
   0x6   :  { %569 = shalt.err (!%p566_p2)  }
   0x7   :  { %s720_s19 = smov [#allocation3]  }
   0x8   :  { %9 = dma.hbm_to_smem %s990_s0, 16, %s720_s19, [#allocation2] }
   0x9   :  { %682 = dma.done.wait [#allocation2], 16 }
   0xa   :  { %683 = vsyncadd [#allocation2], 4294967280 }
   0xb   :  { %11 = sfence }
   0xc   :  { %12 = vsyncpa [#allocation5], 0 }
   0xd   :  { %14 = vsyncpa [#allocation5 + $0x1], 0 }
   0xe   :  { %15 = vsyncpa [#allocation8], 0 }
   0xf   :  { %17 = vsyncpa [#allocation8 + $0x1], 0 }
  0x10   :  { %18 = vsyncpa [#allocation6], 0 }
  0x11   :  { %20 = vsyncpa [#allocation6 + $0x1], 0  ;;  %s762_s22 = smov 0   ;;  %s764_s23 = smov 0  }
  0x12   :  { %s766_s24 = smov 0   ;;  %s768_s25 = smov 0  }
  0x13   :  { %s770_s26 = smov 0   ;;  %s772_s0 = smov 0  }
  0x14 LB: > { %s441_s27 = sadd.s32 4294967295, %s718_s0   ;;  %s442_s28 = sadd.s32 4294967294, %s718_s0   ;;  %s718_s0 = sphi %s772_s0, %s26_s0   ;;  %s714_s26 = sphi %s770_s26, %s1012_s26   ;;  %s710_s25 = sphi %s768_s25, %s1011_s25   ;;  %s706_s24 = sphi %s766_s24, %s1010_s24   ;;  %s702_s23 = sphi %s764_s23, %s1009_s23   ;;  %s698_s22 = sphi %s762_s22, %s1008_s22  }
  0x15   : > { %s38_s29 = sadd.s32 1, %s714_s26  ;;  %s47_s30 = sadd.s32 1, %s706_s24 }
  0x16   : > { %p40_p3 = scmp.ge.s32.totalorder %s38_s29, 2  ;;  %p54_p4 = scmp.ne.s32.totalorder %s706_s24, %s702_s23 }
  0x17   : > { %p55_p5 = scmp.eq.s32.totalorder %s718_s0, 0  ;;  %p60_p6 = scmp.ne.s32.totalorder %s702_s23, %s698_s22 }
  0x18   : > { %s1014_s29 = smov (%p40_p3, %s38_s29), 0  ;;  %p61_p8 = scmp.eq.s32.totalorder %s441_s27, 0 }
  0x19   : > { %p803_p7 = por %p55_p5, %p54_p4  ;;  %s42_s5 = ssub.s32 %s714_s26, %s1014_s29 }
  0x1a   : > { %p112_p9 = scmp.eq.s32.totalorder %s441_s27, 1  ;;  %p45_p10 = scmp.eq.s32.totalorder %s42_s5, 0 }
  0x1b   : > { %p809_p11 = por %p61_p8, %p60_p6  ;;  %p118_p13 = scmp.eq.s32.totalorder %s442_s28, 1 }
  0x1c   : > { %p813_p12 = por %p112_p9, %p54_p4  ;;  %p499_p2 = scmp.lt.s32.totalorder %s718_s0, 2 }
  0x1d   : > { %s997_s6 = scalar_select %p809_p11, 1, 0 }
  0x1e   : > { %s998_s7 = scalar_select %p813_p12, 1, 0 }
  0x1f   : > { %s818_s8 = scalar_select %p45_p10, %s706_s24, %s47_s30  }
  0x20   : > { %p820_p0 = por %p118_p13, %p60_p6  ;;  %s827_s10 = sand.u32 1, %s706_s24  }
  0x21   : > { %s445_s11 = sshll.u32 %s827_s10, 3  ;;  %s446_s12 = sshll.u32 %s714_s26, 7 }
  0x22   : > { %s999_s9 = scalar_select %p820_p0, 1, 0 }
  0x23   : > { %s834_s15 = scalar_lea.hbm %s991_s1, %s446_s12  ;;  %s142_s16 = scalar_lea.vmem [#allocation4], %s445_s11 }
  0x24   : > { %s150_s17 = sshll.u32 %s142_s16, 4  ;;  %p840_p3 = pnand %p499_p2, %p803_p7  ;;  %s836_s17 = int_to_ptr.vmem [resolvable:$true] %s150_s17 }
  0x25   : > { %s139_s19 = scalar_lea.sflag [#allocation5], %s827_s10  ;;  %s570_s20 = scalar_lea.hbm %s834_s15, 128 }
  0x26   : > { %p571_p6 = scmp.ne.s32.totalorder %s834_s15, %s570_s20  ;;  %p572_p8 = pneg %p840_p3 }
  0x27   : > { %s575_s28 = scalar_lea.hbm %s991_s1, 256  ;;  %p576_p7 = scmp.lt.u32.totalorder %s834_s15, %s991_s1 }
  0x28   : > { %p573_p9 = pnand %p572_p8, %p571_p6  ;;  %p577_p13 = scmp.lt.u32.totalorder %s575_s28, %s570_s20 }
  0x29   : > { %p579_p1 = scmp.lt.u32.totalorder %s570_s20, %s834_s15 }
  0x2a   : > { %p574_p10 = pneg %p573_p9  ;;  %p578_p2 = por %p577_p13, %p576_p7 }
  0x2c   : > { %p580_p4 = por %p579_p1, %p578_p2 }
  0x2e   : > { %p581_p5 = pnand %p580_p4, %p574_p10 }
  0x30   : > { %584 = shalt.err (!%p581_p5)
}
  0x31   : > { %s585_s5 = scalar_lea.vmem %s836_s17, 128  ;;  %s721_s11 = smov [#allocation4]  }
  0x32   : > { %p586_p6 = scmp.ne.s32.totalorder %s836_s17, %s585_s5  ;;  %s590_s12 = sshll.u32 %s721_s11, 4  ;;  %s591_s12 = int_to_ptr.vmem [resolvable:$false] %s590_s12 }
  0x33   : > { %s592_s13 = scalar_lea.vmem %s591_s12, 256  ;;  %p593_p12 = scmp.lt.s32.totalorder %s836_s17, %s591_s12 }
  0x34   : > { %p588_p9 = pnand %p586_p6, %p572_p8  ;;  %p594_p7 = scmp.lt.s32.totalorder %s592_s13, %s585_s5 }
  0x36   : > { %p589_p0 = pneg %p588_p9  ;;  %p595_p13 = por %p594_p7, %p593_p12 }
  0x38   : > { %p596_p1 = pnand %p595_p13, %p589_p0 }
  0x3a   : > { %599 = shalt.err (!%p596_p1)
}
  0x3b   : > { %491 = dma.hbm_to_vmem [thread:$0]  (!%p840_p3), %s834_s15, 128, %s836_s17, %s139_s19  }
  0x3c   : > { %p1001_p4 = scmp.lt.s32.totalorder %s718_s0, 3  ;;  %p1002_p5 = scmp.ge.s32.totalorder %s718_s0, 1 }
  0x3d   : > { %s447_s16 = sshll.u32 %s827_s10, 5  ;;  %s459_s20 = sshll.u32 %s714_s26, 9 }
  0x3e   : > { %p876_p10 = pnand %p1002_p5, %p1001_p4  ;;  %s885_s28 = scalar_lea.hbm %s992_s2, %s459_s20 }
  0x3f   : > { %s161_s30 = scalar_lea.vmem [#allocation7], %s447_s16  ;;  %s158_s15 = scalar_lea.sflag [#allocation8], %s827_s10 }
  0x40   : > { %s168_s4 = sshll.u32 %s161_s30, 4  ;;  %s600_s17 = scalar_lea.hbm %s885_s28, 512  ;;  %s887_s4 = int_to_ptr.vmem [resolvable:$true] %s168_s4 }
  0x41   : > { %p601_p12 = scmp.ne.s32.totalorder %s885_s28, %s600_s17  ;;  %s605_s11 = scalar_lea.hbm %s992_s2, 1024 }
  0x42   : > { %p606_p6 = scmp.lt.u32.totalorder %s885_s28, %s992_s2  ;;  %p607_p9 = scmp.lt.u32.totalorder %s605_s11, %s600_s17 }
  0x43   : > { %p603_p0 = pnand %p601_p12, %p572_p8  ;;  %p609_p13 = scmp.lt.u32.totalorder %s600_s17, %s885_s28 }
  0x44   : > { %p608_p7 = por %p607_p9, %p606_p6 }
  0x45   : > { %p604_p2 = pneg %p603_p0 }
  0x46   : > { %p610_p1 = por %p609_p13, %p608_p7 }
  0x48   : > { %p611_p4 = pnand %p610_p1, %p604_p2 }
  0x4a   : > { %614 = shalt.err (!%p611_p4)
}
  0x4b   : > { %s615_s16 = scalar_lea.vmem %s887_s4, 512  ;;  %s722_s20 = smov [#allocation7]  }
  0x4c   : > { %p616_p5 = scmp.ne.s32.totalorder %s887_s4, %s615_s16  ;;  %s620_s21 = sshll.u32 %s722_s20, 4  ;;  %s621_s21 = int_to_ptr.vmem [resolvable:$false] %s620_s21 }
  0x4d   : > { %s622_s27 = scalar_lea.vmem %s621_s21, 1024  ;;  %p623_p11 = scmp.lt.s32.totalorder %s887_s4, %s621_s21 }
  0x4e   : > { %p618_p12 = pnand %p616_p5, %p572_p8  ;;  %p624_p6 = scmp.lt.s32.totalorder %s622_s27, %s615_s16 }
  0x50   : > { %p619_p0 = pneg %p618_p12  ;;  %p625_p9 = por %p624_p6, %p623_p11 }
  0x52   : > { %p626_p7 = pnand %p625_p9, %p619_p0 }
  0x54   : > { %629 = shalt.err (!%p626_p7)
}
  0x55   : > { %s723_s30 = smov 128   ;;  %s724_s17 = smov 8  }
  0x56   : > { %494 = dma.hbm_to_vmem [thread:$0]  (!%p840_p3), %s885_s28, 512, %s887_s4, %s158_s15, %s723_s30, %s723_s30, %s724_s17  }
  0x57   : > { %180 = sbr.rel (%p876_p10) target bundleno = 657 (0x291), region = 28  ;;  %s918_s19 = sand.u32 (!%p876_p10), 1, %s702_s23  }
  0x58   : > { %s451_s5 = sshll.u32 (!%p876_p10), %s918_s19, 3  ;;  %s183_s11 = scalar_lea.sflag (!%p876_p10), [#allocation5], %s918_s19 }
  0x59   : > { %s186_s12 = scalar_lea.vmem (!%p876_p10), [#allocation4], %s451_s5  ;;  %p1004_p11 = scmp.ne.s32.totalorder (!%p876_p10), %s997_s6, 0 }
  0x5e   : > { %685 = dma.done.wait (%p1004_p11), %s183_s11, 128  }
  0x5f   : > { %687 = vsyncadd (%p1004_p11), %s183_s11, 4294967168  ;;  %s452_s10 = sshll.u32 %s918_s19, 5  ;;  %s192_s18 = scalar_lea.sflag [#allocation8], %s918_s19 }
  0x60   : > { %s195_s14 = scalar_lea.vmem [#allocation7], %s452_s10 }
  0x61   : > { %689 = dma.done.wait (%p1004_p11), %s192_s18, 512  }
  0x62   : > { %691 = vsyncadd (%p1004_p11), %s192_s18, 4294966784  ;;  %v725_v0 = vmov 0.0|0.0   ;;  %vm726_vm0 = vmmov 0   ;;  %v727_v1 = vmov 0.0   ;;  %v223_v2 = vld [vmem:[%s195_s14] sm:$0xff]  ;;  %v224_v3 = vld [vmem:[%s195_s14 + $0x8] sm:$0xff]  ;;  %v227_v9 = vlaneseq }
  0x63   : > { %476 = vmatprep.subr.bf16.mxu0 %v725_v0  ;;  %473 = vmatprep.mubr.msk.f32.mxu0 %vm726_vm0, %v727_v1  ;;  %v225_v4 = vld [vmem:[%s195_s14 + $0x10] sm:$0xff]  ;;  %v477_v5 = vpack.c.bf16 %v224_v3, %v223_v2  ;;  %v226_v6 = vld [vmem:[%s195_s14 + $0x18] sm:$0xff]  ;;  %vm232_vm1 = vcmask 261120   ;;  %s221_s6 = sld [smem:[#allocation3 + %s710_s25]]  ;;  %v728_v12 = vmov -1e+30  }
  0x64   : > { %v480_v7 = vpack.c.bf16 %v226_v6, %v225_v4  ;;  %v222_v8 = vld [vmem:[%s186_s12] sm:$0xff]  ;;  %v228_v10 = vand.u32 127, %v227_v9  ;;  %s456_s28 = sshll.u32 %s710_s25, 7  ;;  %s220_s4 = scalar_lea.vmem [#allocation9], %s451_s5 }
  0x65   : > { %478 = vmatpush3.bf16.msra.mxu0 %v477_v5  ;;  %s338_s15 = sshll.u32 %s220_s4, 4  ;;  %s941_s20 = scalar_lea.hbm %s993_s3, %s456_s28  ;;  %s943_s15 = int_to_ptr.vmem [resolvable:$true] %s338_s15 }
  0x66   : > { %479 = vmatprep.subr.bf16.mxu0 %v725_v0  ;;  %s324_s21 = scalar_lea.sflag [#allocation6], %s918_s19  ;;  %s630_s27 = scalar_lea.vmem %s943_s15, 128 }
  0x67   : > { %p631_p3 = scmp.ne.s32.totalorder %s943_s15, %s630_s27  ;;  %p1005_p8 = scmp.ne.s32.totalorder %s998_s7, 0 }
  0x68   : > { %s729_s25 = smov [#allocation9]  }
  0x69   : > { %481 = vmatpush3.bf16.msra.mxu0 %v480_v7  ;;  %v229_v11 = vstv %s221_s6  ;;  %p632_p10 = pnand %p631_p3, %p1005_p8  ;;  %s634_s30 = sshll.u32 %s729_s25, 4  ;;  %s635_s30 = int_to_ptr.vmem [resolvable:$false] %s634_s30 }
  0x6a   : > { %vm230_vm2 = vcmp.lt.s32.totalorder %v228_v10, %v229_v11  ;;  %s636_s17 = scalar_lea.vmem %s635_s30, 256  ;;  %p637_p13 = scmp.lt.s32.totalorder %s943_s15, %s635_s30 }
  0x6b   : > { %v231_v13 = vsel %vm230_vm2, 0.0, %v728_v12  ;;  %p633_p2 = pneg %p632_p10  ;;  %p638_p1 = scmp.lt.s32.totalorder %s636_s17, %s630_s27 }
  0x6c   : > { %474 = vmatmul.mubr.msk.f32.vlgmr.msra.gmra.mrb[0].mxu0 %vm232_vm1, %v222_v8 }
  0x6d   : > { %p639_p4 = por %p638_p1, %p637_p13 }
  0x6f   : > { %p640_p5 = pnand %p639_p4, %p633_p2 }
 0x13f   : > { %v302_v14 = vpop.f32.mrb[0].mxu0 }
 0x140   : > { %v303_v15 = vadd.f32 %v302_v14, %v231_v13  ;;  %v475_v16 = vpop.f32.mrb[1].mxu0 }
 0x142   : > { %306 = vmax.xlane.f32.xlu0 %v303_v15 }
 0x1cf   : > { %v307_v17 = vpop.xlane.xlu0 %306 }
 0x1d0   : > { %v308_v18 = vsub.f32 %v303_v15, %v307_v17 }
 0x1d2   : > { %v309_v19 = vmul.f32 1.442695, %v308_v18 }
 0x1d4   : > { %556 = vpow2.f32 %v309_v19 }
 0x1de   : > { %v557_v20 = vpop.eup %556 }
 0x1df   : > { %v313_v21 = vsel %vm230_vm2, %v557_v20, 0.0 }
 0x1e0   : > { %314 = vadd.xlane.f32.xlu0 %v313_v21 }
 0x26d   : > { %v315_v22 = vpop.xlane.xlu0 %314 }
 0x26e   : > { %v316_v23 = vmax.f32 %v315_v22, 1.0 }
 0x270   : > { %558 = vrcp.f32 %v316_v23 }
 0x27a   : > { %v559_v24 = vpop.eup %558 }
 0x27b   : > { %v318_v25 = vmul.f32 %v559_v24, %v316_v23 }
 0x27d   : > { %v319_v26 = vsub.f32 2.0, %v318_v25 }
 0x27f   : > { %v320_v27 = vmul.f32 %v559_v24, %v319_v26 }
 0x281   : > { %v321_v28 = vmul.f32 %v320_v27, %v313_v21 }
 0x283   : > { %322 = vst [vmem:[%s220_s4] sm:$0xff] %v321_v28 }
 0x284   : > { %643 = shalt.err (!%p640_p5)
}
 0x285   : > { %s644_s19 = scalar_lea.hbm %s941_s20, 128  ;;  %s648_s12 = scalar_lea.hbm %s993_s3, 256 }
 0x286   : > { %p645_p12 = scmp.ne.s32.totalorder %s941_s20, %s644_s19  ;;  %p649_p9 = scmp.lt.u32.totalorder %s941_s20, %s993_s3 }
 0x287   : > { %p650_p7 = scmp.lt.u32.totalorder %s648_s12, %s644_s19  ;;  %p652_p3 = scmp.lt.u32.totalorder %s644_s19, %s941_s20 }
 0x288   : > { %p646_p0 = pnand %p645_p12, %p1005_p8 }
 0x289   : > { %p651_p11 = por %p650_p7, %p649_p9 }
 0x28a   : > { %p647_p6 = pneg %p646_p0 }
 0x28b   : > { %p653_p10 = por %p652_p3, %p651_p11 }
 0x28d   : > { %p654_p2 = pnand %p653_p10, %p647_p6 }
 0x28f   : > { %657 = shalt.err (!%p654_p2)
}
 0x290   : > { %486 = dma.vmem_to_hbm [thread:$0]  (%p1005_p8), %s943_s15, 128, %s941_s20, %s324_s21  }
 0x291 PF: > { %s350_s14 = sand.u32 1, %s698_s22   ;;  %p1006_p13 = scmp.ne.s32.totalorder %s999_s9, 0 }
 0x292   : > { %p1007_p1 = scmp.ge.s32.totalorder %s718_s0, 2  ;;  %s351_s6 = scalar_lea.sflag [#allocation6], %s350_s14 }
 0x294   : > { %p496_p4 = pnand %p1007_p1, %p1006_p13 }
 0x296   : > { %693 = dma.done.wait (!%p496_p4), %s351_s6, 128  }
 0x297   : > { %695 = vsyncadd (!%p496_p4), %s351_s6, 4294967168  ;;  %s26_s0 = sadd.s32 1, %s718_s0   ;;  %s1008_s22 = smov %s702_s23 }
 0x298   : > { %p23_p5 = scmp.ge.s32.totalorder %s26_s0, 4   ;;  %s1009_s23 = smov %s706_s24 }
 0x299   : > { %s1010_s24 = smov %s818_s8  ;;  %s1011_s25 = smov %s714_s26 }
 0x29a   : > { %s1012_s26 = smov %s1014_s29  ;;  %25 = sbr.rel (!%p23_p5) target bundleno = 20 (0x14), region = 86 }
 0x2a1   :  { %356 = vsyncpa [#allocation5], 1 }
 0x2a2   :  { %358 = vsyncpa [#allocation5 + $0x1], 1 }
 0x2a3   :  { %359 = vsyncpa [#allocation8], 1 }
 0x2a4   :  { %361 = vsyncpa [#allocation8 + $0x1], 1 }
 0x2a5   :  { %362 = vsyncpa [#allocation6], 1 }
 0x2a6   :  { %364 = vsyncpa [#allocation6 + $0x1], 1 }

</bundles_post_ra>
